<compile_context>
chip_gen: v6e
topology: v6e:2x2x1
jax: 0.10.0
libtpu: 0.0.40
codegen_flags: <defaults>
</compile_context>

<pallas_src>
import functools

import jax
import jax.numpy as jnp
from jax.experimental import pallas as pl
from jax.experimental.pallas import tpu as pltpu

SUBLANE = 8  # f32 sublane tile height


def _round_up(n, m):
    return ((n + m - 1) // m) * m


def _slab_layout(layers):
    """Static packing layout for the single param slab.

    Layer i occupies round_up(n_in + 1, 8) rows (n_in weight rows followed by
    one bias row), so every per-layer slice inside the kernel starts on a
    sublane-tile boundary.  Slab width = widest layer output.
    """
    width = max(layers[1:])
    offsets = []
    off = 0
    for i in range(len(layers) - 1):
        offsets.append(off)
        off += _round_up(layers[i] + 1, SUBLANE)
    total_rows = _round_up(off, SUBLANE)
    return width, tuple(offsets), total_rows


def _mlp_fused_kernel(x_ref, p_ref, o_ref, *, layers, offsets):
    """Fused MLP forward: tanh on hidden layers, sigmoid on the final layer.

    Intermediate activations stay in vregs; params are unpacked from the
    single slab via static (sublane-aligned) ref slices.
    """
    num_layers = len(layers) - 1
    h = x_ref[...]
    for i in range(num_layers):
        n_in, n_out = layers[i], layers[i + 1]
        off = offsets[i]
        w = p_ref[pl.ds(off, n_in), :]          # (n_in, W_slab) static view
        b = p_ref[pl.ds(off + n_in, 1), :]      # (1, W_slab) bias row
        y = jnp.dot(h, w, preferred_element_type=jnp.float32) + b
        if i < num_layers - 1:
            h = jnp.tanh(y)[:, :n_out]          # drop padded cols (no-op if equal)
        else:
            # sigmoid(y) == 0.5 * tanh(0.5 * y) + 0.5  (EUP tanh, full f32
            # precision, no exp overflow for large-magnitude inputs).
            s = 0.5 * jnp.tanh(0.5 * y) + 0.5
            o_ref[...] = s[:, :n_out].astype(o_ref.dtype)


def mlp_forward_fused(x, param_slab, layers):
    """One pallas_call for the whole network; exactly 2 input DMAs."""
    B = x.shape[0]
    n_out = layers[-1]
    _, offsets, _ = _slab_layout(layers)
    vmem = pl.BlockSpec(memory_space=pltpu.MemorySpace.VMEM)
    return pl.pallas_call(
        functools.partial(_mlp_fused_kernel, layers=layers, offsets=offsets),
        out_shape=jax.ShapeDtypeStruct((B, n_out), x.dtype),
        in_specs=[vmem, vmem],
        out_specs=vmem,
    )(x, param_slab)


def init_params(layers, key):
    """Xavier-normal weights (matches nn.init.xavier_normal_), zero bias."""
    params = []
    for i in range(len(layers) - 1):
        fan_in, fan_out = layers[i], layers[i + 1]
        key, wk = jax.random.split(key)
        std = (2.0 / (fan_in + fan_out)) ** 0.5
        # Stored as [in_features, out_features] so the kernel does x @ W.
        w = std * jax.random.normal(wk, (fan_in, fan_out), dtype=jnp.float32)
        b = jnp.zeros((fan_out,), dtype=jnp.float32)
        params.append((w, b))
    return params


def pack_params(params, layers):
    """Pack all (W_i, b_i) into ONE contiguous f32 slab.  Runs once at init,
    outside the jitted forward path (padding is free at call time)."""
    width, offsets, total_rows = _slab_layout(layers)
    slab = jnp.zeros((total_rows, width), dtype=jnp.float32)
    for i, (w, b) in enumerate(params):
        n_in, n_out = layers[i], layers[i + 1]
        off = offsets[i]
        slab = slab.at[off:off + n_in, :n_out].set(w)
        slab = slab.at[off + n_in, :n_out].set(b)
    return slab


@functools.partial(jax.jit, static_argnames=("layers",))
def net_forward(x, param_slab, layers):
    """Matches Net.forward: hidden layers use tanh, final layer uses sigmoid."""
    return mlp_forward_fused(x, param_slab, layers)


if __name__ == "__main__":
    # Small MLP consistent with Net(layers=[16, 32, 32, 1])
    layers = (16, 32, 32, 1)
    batch = 8

    key = jax.random.PRNGKey(0)
    key, xk = jax.random.split(key)
    x = jax.random.normal(xk, (batch, layers[0]), dtype=jnp.float32)
    params = init_params(layers, key)
    slab = jax.block_until_ready(pack_params(params, layers))  # built once

    out = net_forward(x, slab, layers)
    out = jax.block_until_ready(out)

    # Pure-JAX reference for correctness.
    ref = x
    for i, (w, b) in enumerate(params):
        ref = ref @ w + b
        ref = jnp.tanh(ref) if i < len(params) - 1 else jax.nn.sigmoid(ref)

    assert out.shape == (batch, layers[-1])
    assert bool(jnp.allclose(out, ref, atol=1e-5, rtol=1e-5)), float(
        jnp.max(jnp.abs(out - ref)))
    assert bool(jnp.all((out >= 0.0) & (out <= 1.0)))  # sigmoid range
    print("KERNEL_OK")
</pallas_src>

<mosaic_0001>
module attributes {stable_mosaic.version = 11 : i64} {
  func.func @_mlp_fused_kernel(%arg0: memref<8x16xf32, #tpu.memory_space<vmem>>, %arg1: memref<104x32xf32, #tpu.memory_space<vmem>>, %arg2: memref<8x1xf32, #tpu.memory_space<vmem>>) attributes {dimension_semantics = [], scalar_prefetch = 0 : i64, scratch_operands = 0 : i64, tpu.core_type = #tpu.core_type<tc>} {
    %c0 = arith.constant 0 : index
    %c0_0 = arith.constant 0 : index
    %0 = vector.load %arg0[%c0, %c0_0] : memref<8x16xf32, #tpu.memory_space<vmem>>, vector<8x16xf32>
    %c0_1 = arith.constant 0 : index
    %c0_2 = arith.constant 0 : index
    %1 = vector.load %arg1[%c0_1, %c0_2] : memref<104x32xf32, #tpu.memory_space<vmem>>, vector<16x32xf32>
    %c16 = arith.constant 16 : index
    %c0_3 = arith.constant 0 : index
    %2 = vector.load %arg1[%c16, %c0_3] : memref<104x32xf32, #tpu.memory_space<vmem>>, vector<1x32xf32>
    %cst = arith.constant dense<0.000000e+00> : vector<8x32xf32>
    %3 = tpu.matmul %0, %1, %cst {dimension_numbers = #tpu.dot_dimension_numbers<[1], [0], [0], [1], [0, 0, 1, 1], [], []>} : vector<8x16xf32>, vector<16x32xf32>, vector<8x32xf32> -> vector<8x32xf32>
    %4 = vector.broadcast %2 : vector<1x32xf32> to vector<8x32xf32>
    %5 = arith.addf %3, %4 : vector<8x32xf32>
    %6 = math.tanh %5 : vector<8x32xf32>
    %c24 = arith.constant 24 : index
    %c0_4 = arith.constant 0 : index
    %7 = vector.load %arg1[%c24, %c0_4] : memref<104x32xf32, #tpu.memory_space<vmem>>, vector<32x32xf32>
    %c56 = arith.constant 56 : index
    %c0_5 = arith.constant 0 : index
    %8 = vector.load %arg1[%c56, %c0_5] : memref<104x32xf32, #tpu.memory_space<vmem>>, vector<1x32xf32>
    %cst_6 = arith.constant dense<0.000000e+00> : vector<8x32xf32>
    %9 = tpu.matmul %6, %7, %cst_6 {dimension_numbers = #tpu.dot_dimension_numbers<[1], [0], [0], [1], [0, 0, 1, 1], [], []>} : vector<8x32xf32>, vector<32x32xf32>, vector<8x32xf32> -> vector<8x32xf32>
    %10 = vector.broadcast %8 : vector<1x32xf32> to vector<8x32xf32>
    %11 = arith.addf %9, %10 : vector<8x32xf32>
    %12 = math.tanh %11 : vector<8x32xf32>
    %c64 = arith.constant 64 : index
    %c0_7 = arith.constant 0 : index
    %13 = vector.load %arg1[%c64, %c0_7] : memref<104x32xf32, #tpu.memory_space<vmem>>, vector<32x32xf32>
    %c96 = arith.constant 96 : index
    %c0_8 = arith.constant 0 : index
    %14 = vector.load %arg1[%c96, %c0_8] : memref<104x32xf32, #tpu.memory_space<vmem>>, vector<1x32xf32>
    %cst_9 = arith.constant dense<0.000000e+00> : vector<8x32xf32>
    %15 = tpu.matmul %12, %13, %cst_9 {dimension_numbers = #tpu.dot_dimension_numbers<[1], [0], [0], [1], [0, 0, 1, 1], [], []>} : vector<8x32xf32>, vector<32x32xf32>, vector<8x32xf32> -> vector<8x32xf32>
    %16 = vector.broadcast %14 : vector<1x32xf32> to vector<8x32xf32>
    %17 = arith.addf %15, %16 : vector<8x32xf32>
    %cst_10 = arith.constant 5.000000e-01 : f32
    %18 = vector.broadcast %cst_10 : f32 to vector<8x32xf32>
    %19 = arith.mulf %18, %17 : vector<8x32xf32>
    %20 = math.tanh %19 : vector<8x32xf32>
    %cst_11 = arith.constant 5.000000e-01 : f32
    %21 = vector.broadcast %cst_11 : f32 to vector<8x32xf32>
    %22 = arith.mulf %21, %20 : vector<8x32xf32>
    %cst_12 = arith.constant 5.000000e-01 : f32
    %23 = vector.broadcast %cst_12 : f32 to vector<8x32xf32>
    %24 = arith.addf %22, %23 : vector<8x32xf32>
    %25 = vector.extract_strided_slice %24 {offsets = [0, 0], sizes = [8, 1], strides = [1, 1]} : vector<8x32xf32> to vector<8x1xf32>
    %c0_13 = arith.constant 0 : index
    %c0_14 = arith.constant 0 : index
    %26 = vector.load %arg2[%c0_13, %c0_14] : memref<8x1xf32, #tpu.memory_space<vmem>>, vector<8x1xf32>
    tpu.vector_store %arg2[%c0_13, %c0_14], %25 {strides = array<i32>} : memref<8x1xf32, #tpu.memory_space<vmem>>, vector<8x1xf32>,
    return
  }
}

</mosaic_0001>

<bundles_post_ra>
// kernel: net_forward.1
= control target key start
LH: loop header
LB: loop body
LE: loop exit
PB: predicated region body
PF: predicated region fallthrough
CT: control target
= control target key end

     0   :  { %v326_v0 = vmov 0.0   ;;  %vm327_vm0 = vmmov 0   ;;  %vm19_vm1 = vcmask 130048   ;;  %vm103_vm2 = vcmask 261120   ;;  %s390_s1 = inlined_call_operand.vmem [shape: f32[104,32], index: 1, kind: input, shape index: {}]   ;;  %s391_s0 = inlined_call_operand.vmem [shape: f32[8,16], index: 0, kind: input, shape index: {}]   ;;  %s392_s2 = inlined_call_operand.vmem [shape: f32[8,1], index: 2, kind: output, shape index: {}]  }
   0x1   :  { %289 = vmatprep.subr.mxu0 %v326_v0  ;;  %v13_v1 = vld [vmem:[%s390_s1 + $0x8] sm:$0xff]  ;;  %v12_v2 = vld [vmem:[%s390_s1] sm:$0xff]  ;;  %293 = vmatprep.mubr.msk.f32.mxu0 %vm327_vm0, %v326_v0  ;;  %v97_v4 = vld [vmem:[%s390_s1 + $0x30] sm:$0xff]  ;;  %vm264_vm3 = vcmask 7168  }
   0x2   :  { %290 = vmatpush3.msra.mxu0 %v13_v1  ;;  %v11_v3 = vld [vmem:[%s391_s0] sm:$0xff]  ;;  %296 = vmatprep.subr.mxu1 %v326_v0  ;;  %v96_v5 = vld [vmem:[%s390_s1 + $0x28] sm:$0xff]  ;;  %v94_v7 = vld [vmem:[%s390_s1 + $0x18] sm:$0xff] }
   0x3   :  { %291 = vmatprep.subr.mxu0 %v326_v0  ;;  %304 = vmatprep.mubr.msk.f32.mxu1 %vm327_vm0, %v326_v0  ;;  %v95_v6 = vld [vmem:[%s390_s1 + $0x20] sm:$0xff]  ;;  %v270_v8 = vld [vmem:[%s390_s1 + $0x10] ss:$0 sm:$0xff]  ;;  %v181_v13 = vld [vmem:[%s390_s1 + $0x58] sm:$0xff] }
   0x4   :  { %292 = vmatpush3.msra.mxu0 %v12_v2  ;;  %297 = vmatpush3.msra.mxu1 %v97_v4  ;;  %v180_v14 = vld [vmem:[%s390_s1 + $0x50] sm:$0xff]  ;;  %v179_v15 = vld [vmem:[%s390_s1 + $0x48] sm:$0xff]  ;;  %v178_v16 = vld [vmem:[%s390_s1 + $0x40] sm:$0xff] }
   0x5   :  { %294 = vmatmul.mubr.msk.f32.vlgmr.msra.gmra.mxu0 %vm19_vm1, %v11_v3  ;;  %307 = vmatprep.subr.mxu0 %v326_v0  ;;  %v272_v17 = vld [vmem:[%s390_s1 + $0x38] ss:$0 sm:$0xff]  ;;  %v274_v22 = vld [vmem:[%s390_s1 + $0x60] ss:$0 sm:$0xff] }
   0x6   :  { %315 = vmatprep.mubr.msk.f32.mxu0 %vm327_vm0, %v326_v0  ;;  %298 = vmatprep.subr.mxu1 %v326_v0 }
   0x7   :  { %299 = vmatpush3.msra.mxu1 %v96_v5  ;;  %308 = vmatpush3.msra.mxu0 %v181_v13 }
   0x8   :  { %300 = vmatprep.subr.mxu1 %v326_v0  ;;  %309 = vmatprep.subr.mxu0 %v326_v0 }
   0x9   :  { %301 = vmatpush3.msra.mxu1 %v95_v6  ;;  %310 = vmatpush3.msra.mxu0 %v180_v14 }
   0xa   :  { %302 = vmatprep.subr.mxu1 %v326_v0  ;;  %311 = vmatprep.subr.mxu0 %v326_v0 }
   0xb   :  { %303 = vmatpush3.msra.mxu1 %v94_v7  ;;  %312 = vmatpush3.msra.mxu0 %v179_v15 }
   0xc   :  { %313 = vmatprep.subr.mxu0 %v326_v0 }
   0xd   :  { %314 = vmatpush3.msra.mxu0 %v178_v16 }
  0xc5   :  { %v89_v9 = vpop.f32.mrf.mxu0 }
  0xc6   :  { %v90_v10 = vadd.f32 %v270_v8, %v89_v9 }
  0xc7   :  { %v295_v11 = vpop.f32.mrf.mxu0 }
  0xc8   :  { %320 = vtanh.f32 %v90_v10 }
  0xd5   :  { %v321_v12 = vpop.eup %320 }
  0xd6   :  { %305 = vmatmul.mubr.msk.f32.vlgmr.msra.gmra.mxu1 %vm103_vm2, %v321_v12 }
 0x196   :  { %v173_v18 = vpop.f32.mrf.mxu1 }
 0x197   :  { %v174_v19 = vadd.f32 %v272_v17, %v173_v18 }
 0x198   :  { %v306_v20 = vpop.f32.mrf.mxu1 }
 0x199   :  { %322 = vtanh.f32 %v174_v19 }
 0x1a6   :  { %v323_v21 = vpop.eup %322 }
 0x1a7   :  { %316 = vmatmul.mubr.msk.f32.vlgmr.msra.gmra.mxu0 %vm103_vm2, %v323_v21 }
 0x267   :  { %v256_v23 = vpop.f32.mrf.mxu0 }
 0x268   :  { %v257_v24 = vadd.f32 %v274_v22, %v256_v23 }
 0x269   :  { %v317_v25 = vpop.f32.mrf.mxu0 }
 0x26a   :  { %v260_v26 = vmul.f32 0.5, %v257_v24 }
 0x26c   :  { %324 = vtanh.f32 %v260_v26 }
 0x279   :  { %v325_v27 = vpop.eup %324 }
 0x27a   :  { %v262_v28 = vmul.f32 0.5, %v325_v27 }
 0x27c   :  { %v263_v29 = vadd.f32 0.5, %v262_v28 }
 0x27e   :  { %265 = vst.msk [vmem:[%s392_s2] sm:$0xff] %vm264_vm3, %v263_v29 }

</bundles_post_ra>
